<compile_context>
chip_gen: v6e
topology: v6e:2x2x1
jax: 0.10.0
libtpu: 0.0.40
codegen_flags: <defaults>
</compile_context>

<pallas_src>
import functools

import jax
import jax.numpy as jnp
from jax.experimental import pallas as pl
from jax.experimental.pallas import tpu as pltpu

LN_EPS = 1e-5          # torch.nn.LayerNorm default
_LANE = 128
_SUBLANE = {4: 8, 2: 16, 1: 32}

# Narrow fallback set for the optional pipeline_mode=pl.Buffered(1) feature (perf-only, identical
# semantics).  Deliberately NOT a broad `except Exception` so genuine lowering / VMEM-OOM errors
# surface.
_BUFFERED_FALLBACK_ERRORS = (TypeError, ValueError, NotImplementedError)
if hasattr(pltpu, "LoweringException"):
    _BUFFERED_FALLBACK_ERRORS = _BUFFERED_FALLBACK_ERRORS + (pltpu.LoweringException,)


def _round_up(a, b):
    return (a + b - 1) // b * b


def _vmem_capacity_bytes():
    """Per-core VMEM capacity (generation aware); conservative 64 MiB fallback."""
    try:
        info = pltpu.get_tpu_info()
        for attr in ("vmem_capacity_bytes", "vmem_size_bytes"):
            cap = getattr(info, attr, None)
            if cap:
                return int(cap)
    except Exception:  # query is best-effort; fall back to the smallest listed generation (v7x)
        pass
    return 64 << 20


def _normalize(x, gamma, beta, mxu_dtype, layer_norm):
    """LayerNorm (two-pass, f32 math, biased variance — matches torch) + cast to the MXU dtype."""
    if layer_norm:
        xf = x.astype(jnp.float32)
        mean = jnp.mean(xf, axis=-1, keepdims=True)
        centered = xf - mean
        var = jnp.mean(centered * centered, axis=-1, keepdims=True)
        xf = centered * jax.lax.rsqrt(var + LN_EPS)
        xf = xf * gamma + beta
        return xf.astype(mxu_dtype)
    if x.dtype != mxu_dtype:
        return x.astype(mxu_dtype)
    return x


def _linear_layer_kernel(x_ref, gamma_ref, beta_ref, w_ref, b_ref, o_ref, *scratch,
                         layer_norm: bool, relu: bool, cache_ln: bool, col_grid_axis: int):
    # x_ref: (tm, D); gamma/beta: (1, D) f32; w_ref: (D, tn); b_ref: (1, tn) f32; o_ref: (tm, tn)
    if cache_ln:
        xn_ref = scratch[0]

        @pl.when(pl.program_id(col_grid_axis) == 0)
        def _():
            # Recompute LN only when the row tile changes (column axis is sequential/"arbitrary").
            xn_ref[...] = _normalize(x_ref[...], gamma_ref[...], beta_ref[...],
                                     xn_ref.dtype, layer_norm)

        xn = xn_ref[...]
    else:
        xn = _normalize(x_ref[...], gamma_ref[...], beta_ref[...], w_ref.dtype, layer_norm)

    # Dropout in eval mode is identity.
    y = jnp.dot(xn, w_ref[...], preferred_element_type=jnp.float32)   # f32 accumulation on MXU
    y = y + b_ref[...]
    if relu:
        y = jnp.maximum(y, 0.0)
    o_ref[...] = y.astype(o_ref.dtype)


def prepare_linear_layer_params(weight, bias, gamma=None, beta=None, *,
                                col_tile=None, weight_vmem_budget_bytes=None,
                                cast_weights_to_bf16=False):
    """One-time parameter preparation (outside the hot path).

    weight: (out_hsz, in_hsz) in PyTorch layout.  Returns the transposed/padded weight
    (D, out_pad) — lane-dense output columns — plus f32 bias/gamma/beta, the chosen column tile
    and the true out_hsz.  `cast_weights_to_bf16=True` opts into bf16 MXU operands (explicit,
    per accuracy budget).
    """
    out_hsz, in_hsz = weight.shape

    w_t = jnp.transpose(weight)                          # (D, out): done once, not per forward
    if cast_weights_to_bf16:
        w_t = w_t.astype(jnp.bfloat16)
    wbytes = jnp.dtype(w_t.dtype).itemsize

    if weight_vmem_budget_bytes is None:
        # ~35% of the chip's VMEM so a fully-resident weight still fits even if the fallback path
        # double-buffers it (~45 MiB on v5e/v6e's 128 MiB, ~22 MiB on v7x's 64 MiB).
        weight_vmem_budget_bytes = int(_vmem_capacity_bytes() * 0.35)

    if col_tile is None:
        # Largest multiple-of-128 column tile whose (D, tn) slab fits the weight budget ->
        # prefer n_col == 1 (weight read from HBM exactly once).
        fit = (weight_vmem_budget_bytes // max(1, in_hsz * wbytes)) // _LANE * _LANE
        col_tile = max(_LANE, min(_round_up(out_hsz, _LANE), fit))
    out_pad = _round_up(out_hsz, col_tile)

    if out_pad != out_hsz:
        w_t = jnp.pad(w_t, ((0, 0), (0, out_pad - out_hsz)))
        bias = jnp.pad(bias, (0, out_pad - out_hsz))
    if gamma is None:
        gamma = jnp.ones((in_hsz,), jnp.float32)
    if beta is None:
        beta = jnp.zeros((in_hsz,), jnp.float32)

    return dict(
        w_t=w_t,
        bias=bias.astype(jnp.float32).reshape(1, out_pad),
        gamma=gamma.astype(jnp.float32).reshape(1, in_hsz),
        beta=beta.astype(jnp.float32).reshape(1, in_hsz),
        out_hsz=out_hsz,
        col_tile=int(col_tile),
    )


def linear_layer_forward(x, params, *, layer_norm=True, relu=True, row_tile=None,
                         grid_order="auto"):
    """x: (N, L, D)  ->  (N, L, out_hsz).  grid_order in {"auto", "row_major", "col_major"}."""
    N, L, D = x.shape
    w_t = params["w_t"]
    assert w_t.shape[0] == D
    out_pad = w_t.shape[1]
    out_hsz = params["out_hsz"]
    tn = int(params["col_tile"])

    M = N * L
    x2 = x.reshape(M, D)

    xbytes = jnp.dtype(x.dtype).itemsize
    wbytes = jnp.dtype(w_t.dtype).itemsize
    sub = _SUBLANE.get(xbytes, 8)
    if row_tile is None:
        row_tile = 512 if xbytes >= 4 else 1024          # big tiles amortize per-step overhead
    tm = min(_round_up(row_tile, sub), _round_up(M, sub))

    cap = _vmem_capacity_bytes()
    budget = int(cap * 0.9)
    may_cache = layer_norm or (x.dtype != w_t.dtype)

    def need_bytes(tm_, tn_):
        # Conservative: everything double-buffered (so the no-Buffered(1) fallback also fits).
        n = 2 * tm_ * D * xbytes          # x row tile
        n += 2 * 2 * 8 * D * 4            # gamma + beta ((1, D) padded to 8 sublanes)
        n += 2 * D * tn_ * wbytes         # weight column tile
        n += 2 * 8 * tn_ * 4              # bias
        n += 2 * tm_ * tn_ * xbytes       # output tile
        if may_cache:
            n += tm_ * D * wbytes         # LN cache scratch
        return n

    # Generation-aware tile shrinking: tm first, then tn (keep tn a multiple of 128 dividing out_pad).
    while need_bytes(tm, tn) > budget and tm > sub:
        tm = max(sub, (tm // 2) // sub * sub)
    while need_bytes(tm, tn) > budget and tn % 256 == 0:
        tn //= 2

    M_pad = _round_up(M, tm)
    if M_pad != M:                                        # only pad when the tail actually exists
        x2 = jnp.pad(x2, ((0, M_pad - M), (0, 0)))
    n_row = M_pad // tm
    n_col = out_pad // tn

    # Grid order: minimize total HBM re-reads.
    #   row-major:  x read once, weight re-read n_row times   -> good when x is heavy / W resident.
    #   col-major:  weight read once, x re-read n_col times    -> good when W is heavy and M small.
    x_total = M_pad * D * xbytes
    w_total = D * out_pad * wbytes
    if grid_order == "col_major":
        weight_outer = True
    elif grid_order == "row_major":
        weight_outer = False
    else:
        weight_outer = (n_col > 1 and n_row > 1 and
                        (n_col - 1) * x_total < (n_row - 1) * w_total)

    cache_ln = (not weight_outer) and n_col > 1 and may_cache

    vmem_need = need_bytes(tm, tn)
    vmem_limit = int(min(cap, max(vmem_need + (vmem_need >> 2) + (4 << 20), 16 << 20)))

    kernel = functools.partial(_linear_layer_kernel, layer_norm=layer_norm, relu=relu,
                               cache_ln=cache_ln, col_grid_axis=1)
    scratch_shapes = [pltpu.VMEM((tm, D), w_t.dtype)] if cache_ln else []

    def run(single_buffer_consts):
        const = dict(pipeline_mode=pl.Buffered(1)) if single_buffer_consts else {}
        wconst = const if (n_col == 1 and not weight_outer) else {}
        if weight_outer:
            grid = (n_col, n_row)
            in_specs = [
                pl.BlockSpec((tm, D), lambda j, i: (i, 0)),             # x (re-streamed)
                pl.BlockSpec((1, D), lambda j, i: (0, 0), **const),     # gamma (resident)
                pl.BlockSpec((1, D), lambda j, i: (0, 0), **const),     # beta  (resident)
                pl.BlockSpec((D, tn), lambda j, i: (0, j)),             # W^T tile (outer axis)
                pl.BlockSpec((1, tn), lambda j, i: (0, j)),             # bias tile
            ]
            out_specs = pl.BlockSpec((tm, tn), lambda j, i: (i, j))
            semantics = ("arbitrary", "parallel")                       # rows split across TCs
        else:
            grid = (n_row, n_col)
            in_specs = [
                pl.BlockSpec((tm, D), lambda i, j: (i, 0)),             # x row tile
                pl.BlockSpec((1, D), lambda i, j: (0, 0), **const),     # gamma (resident)
                pl.BlockSpec((1, D), lambda i, j: (0, 0), **const),     # beta  (resident)
                pl.BlockSpec((D, tn), lambda i, j: (0, j), **wconst),   # W^T column tile
                pl.BlockSpec((1, tn), lambda i, j: (0, j), **wconst),   # bias column tile
            ]
            out_specs = pl.BlockSpec((tm, tn), lambda i, j: (i, j))     # lane-dense (tn % 128 == 0)
            semantics = ("parallel", "arbitrary")                       # col axis sequential (LN cache)
        return pl.pallas_call(
            kernel,
            out_shape=jax.ShapeDtypeStruct((M_pad, out_pad), x.dtype),
            grid=grid,
            in_specs=in_specs,
            out_specs=out_specs,
            scratch_shapes=scratch_shapes,
            compiler_params=pltpu.CompilerParams(
                dimension_semantics=semantics,
                vmem_limit_bytes=vmem_limit),
        )(x2, params["gamma"], params["beta"], w_t, params["bias"])

    # Single-buffer constant blocks only when it saves meaningful VMEM (large resident weights).
    want_single_buffer = (D * tn * wbytes) > (4 << 20)
    try:
        out = run(want_single_buffer)
    except _BUFFERED_FALLBACK_ERRORS:
        if not want_single_buffer:
            raise
        out = run(False)                                  # perf-only fallback; semantics identical

    if M_pad != M or out_pad != out_hsz:
        out = out[:M, :out_hsz]
    return out.reshape(N, L, out_hsz)


def _reference(x, gamma, beta, weight, bias, *, layer_norm=True, relu=True):
    x = x.astype(jnp.float32)
    if layer_norm:
        mean = jnp.mean(x, axis=-1, keepdims=True)
        var = jnp.mean((x - mean) ** 2, axis=-1, keepdims=True)
        x = (x - mean) / jnp.sqrt(var + LN_EPS)
        x = x * gamma + beta
    y = x @ weight.T.astype(jnp.float32) + bias
    if relu:
        y = jnp.maximum(y, 0.0)
    return y


if __name__ == "__main__":
    key = jax.random.PRNGKey(0)
    k1, k2, k3, k4, k5, k6, k7 = jax.random.split(key, 7)

    # ---- Test 1: tiny shapes consistent with the (N, L, D) forward; resident weight (n_col=1) --
    N, L, in_hsz, out_hsz = 2, 8, 32, 32
    x = jax.random.normal(k1, (N, L, in_hsz), dtype=jnp.float32)
    gamma = jnp.ones((in_hsz,), jnp.float32)              # LayerNorm defaults
    beta = jnp.zeros((in_hsz,), jnp.float32)
    weight = jax.random.normal(k2, (out_hsz, in_hsz), jnp.float32) * 0.05
    bias = jax.random.normal(k3, (out_hsz,), jnp.float32) * 0.05

    params = prepare_linear_layer_params(weight, bias, gamma, beta)
    out = jax.block_until_ready(linear_layer_forward(x, params, layer_norm=True, relu=True))
    ref = _reference(x, gamma, beta, weight, bias)
    assert out.shape == (N, L, out_hsz)
    # MXU may run f32 operands at reduced (bf16-class) precision; keep tolerance a bit loose.
    assert jnp.allclose(out, ref, atol=2e-3, rtol=2e-3), "test1 mismatch vs reference"

    # ---- Test 2: multi-tile grid (n_row=2, n_col=3), row-major order + LayerNorm cache ---------
    out_hsz2 = 300
    gamma2 = 1.0 + 0.1 * jax.random.normal(k4, (in_hsz,), jnp.float32)
    beta2 = 0.1 * jax.random.normal(k5, (in_hsz,), jnp.float32)
    weight2 = jax.random.normal(k6, (out_hsz2, in_hsz), jnp.float32) * 0.05
    bias2 = jax.random.normal(k7, (out_hsz2,), jnp.float32) * 0.05
    params2 = prepare_linear_layer_params(weight2, bias2, gamma2, beta2, col_tile=128)
    out2 = jax.block_until_ready(
        linear_layer_forward(x, params2, row_tile=8, grid_order="row_major"))
    ref2 = _reference(x, gamma2, beta2, weight2, bias2)
    assert out2.shape == (N, L, out_hsz2)
    assert jnp.allclose(out2, ref2, atol=2e-3, rtol=2e-3), "test2 mismatch vs reference"

    # ---- Test 3: weight-outer (column-major) grid order -----------------------------------------
    out3 = jax.block_until_ready(
        linear_layer_forward(x, params2, row_tile=8, grid_order="col_major"))
    assert jnp.allclose(out3, ref2, atol=2e-3, rtol=2e-3), "test3 mismatch vs reference"

    # ---- Test 4: explicit bf16 weight opt-in (native-rate MXU path) -----------------------------
    params4 = prepare_linear_layer_params(weight, bias, gamma, beta, cast_weights_to_bf16=True)
    out4 = jax.block_until_ready(linear_layer_forward(x, params4))
    assert jnp.allclose(out4, ref, atol=3e-2, rtol=3e-2), "test4 (bf16) mismatch vs reference"

    print("KERNEL_OK")
</pallas_src>

<mosaic_0001>
module attributes {stable_mosaic.version = 11 : i64} {
  func.func @_linear_layer_kernel(%arg0: i32, %arg1: i32, %arg2: memref<16x32xf32, #tpu.memory_space<vmem>>, %arg3: memref<1x32xf32, #tpu.memory_space<vmem>>, %arg4: memref<1x32xf32, #tpu.memory_space<vmem>>, %arg5: memref<32x128xf32, #tpu.memory_space<vmem>>, %arg6: memref<1x128xf32, #tpu.memory_space<vmem>>, %arg7: memref<16x128xf32, #tpu.memory_space<vmem>>) attributes {dimension_semantics = [#tpu.dimension_semantics<parallel>, #tpu.dimension_semantics<arbitrary>], iteration_bounds = array<i64: 1, 1>, scalar_prefetch = 0 : i64, scratch_operands = 0 : i64, tpu.core_type = #tpu.core_type<tc>, window_params = [{transform_indices = @transform_0, window_bounds = array<i64: 16, 32>}, {pipeline_mode = #tpu.pipeline_mode<synchronous>, transform_indices = @transform_1, window_bounds = array<i64: 1, 32>}, {pipeline_mode = #tpu.pipeline_mode<synchronous>, transform_indices = @transform_2, window_bounds = array<i64: 1, 32>}, {transform_indices = @transform_3, window_bounds = array<i64: 32, 128>}, {transform_indices = @transform_4, window_bounds = array<i64: 1, 128>}, {transform_indices = @transform_5, window_bounds = array<i64: 16, 128>}]} {
    %c0 = arith.constant 0 : index
    %c0_0 = arith.constant 0 : index
    %0 = vector.load %arg2[%c0, %c0_0] : memref<16x32xf32, #tpu.memory_space<vmem>>, vector<16x32xf32>
    %c0_1 = arith.constant 0 : index
    %c0_2 = arith.constant 0 : index
    %1 = vector.load %arg3[%c0_1, %c0_2] : memref<1x32xf32, #tpu.memory_space<vmem>>, vector<1x32xf32>
    %c0_3 = arith.constant 0 : index
    %c0_4 = arith.constant 0 : index
    %2 = vector.load %arg4[%c0_3, %c0_4] : memref<1x32xf32, #tpu.memory_space<vmem>>, vector<1x32xf32>
    %cst = arith.constant dense<0.000000e+00> : vector<16xf32>
    %3 = vector.multi_reduction <add>, %0, %cst [1] : vector<16x32xf32> to vector<16xf32>
    %4 = vector.shape_cast %3 : vector<16xf32> to vector<16x1xf32>
    %cst_5 = arith.constant 3.200000e+01 : f32
    %5 = vector.broadcast %cst_5 : f32 to vector<16x1xf32>
    %6 = arith.divf %4, %5 : vector<16x1xf32>
    %7 = vector.broadcast %6 : vector<16x1xf32> to vector<16x32xf32>
    %8 = arith.subf %0, %7 : vector<16x32xf32>
    %9 = arith.mulf %8, %8 : vector<16x32xf32>
    %cst_6 = arith.constant dense<0.000000e+00> : vector<16xf32>
    %10 = vector.multi_reduction <add>, %9, %cst_6 [1] : vector<16x32xf32> to vector<16xf32>
    %11 = vector.shape_cast %10 : vector<16xf32> to vector<16x1xf32>
    %cst_7 = arith.constant 3.200000e+01 : f32
    %12 = vector.broadcast %cst_7 : f32 to vector<16x1xf32>
    %13 = arith.divf %11, %12 : vector<16x1xf32>
    %cst_8 = arith.constant 9.99999974E-6 : f32
    %14 = vector.broadcast %cst_8 : f32 to vector<16x1xf32>
    %15 = arith.addf %13, %14 : vector<16x1xf32>
    %16 = math.rsqrt %15 : vector<16x1xf32>
    %17 = vector.broadcast %16 : vector<16x1xf32> to vector<16x32xf32>
    %18 = arith.mulf %8, %17 : vector<16x32xf32>
    %19 = vector.broadcast %1 : vector<1x32xf32> to vector<16x32xf32>
    %20 = arith.mulf %18, %19 : vector<16x32xf32>
    %21 = vector.broadcast %2 : vector<1x32xf32> to vector<16x32xf32>
    %22 = arith.addf %20, %21 : vector<16x32xf32>
    %c0_9 = arith.constant 0 : index
    %c0_10 = arith.constant 0 : index
    %23 = vector.load %arg5[%c0_9, %c0_10] : memref<32x128xf32, #tpu.memory_space<vmem>>, vector<32x128xf32>
    %cst_11 = arith.constant dense<0.000000e+00> : vector<16x128xf32>
    %24 = tpu.matmul %22, %23, %cst_11 {dimension_numbers = #tpu.dot_dimension_numbers<[1], [0], [0], [1], [0, 0, 1, 1], [], []>} : vector<16x32xf32>, vector<32x128xf32>, vector<16x128xf32> -> vector<16x128xf32>
    %c0_12 = arith.constant 0 : index
    %c0_13 = arith.constant 0 : index
    %25 = vector.load %arg6[%c0_12, %c0_13] : memref<1x128xf32, #tpu.memory_space<vmem>>, vector<1x128xf32>
    %26 = vector.broadcast %25 : vector<1x128xf32> to vector<16x128xf32>
    %27 = arith.addf %24, %26 : vector<16x128xf32>
    %cst_14 = arith.constant 0.000000e+00 : f32
    %28 = vector.broadcast %cst_14 : f32 to vector<16x128xf32>
    %29 = arith.maximumf %27, %28 : vector<16x128xf32>
    %c0_15 = arith.constant 0 : index
    %c0_16 = arith.constant 0 : index
    %30 = vector.load %arg7[%c0_15, %c0_16] : memref<16x128xf32, #tpu.memory_space<vmem>>, vector<16x128xf32>
    tpu.vector_store %arg7[%c0_15, %c0_16], %29 {strides = array<i32>} : memref<16x128xf32, #tpu.memory_space<vmem>>, vector<16x128xf32>,
    return
  }
  func.func @transform_0(%arg0: i32, %arg1: i32) -> (i32, i32) {
    %c0_i32 = arith.constant 0 : i32
    %c0_i32_0 = arith.constant 0 : i32
    return %arg0, %c0_i32 : i32, i32
  }
  func.func @transform_1(%arg0: i32, %arg1: i32) -> (i32, i32) {
    %c0_i32 = arith.constant 0 : i32
    %c0_i32_0 = arith.constant 0 : i32
    %c0_i32_1 = arith.constant 0 : i32
    return %c0_i32, %c0_i32_0 : i32, i32
  }
  func.func @transform_2(%arg0: i32, %arg1: i32) -> (i32, i32) {
    %c0_i32 = arith.constant 0 : i32
    %c0_i32_0 = arith.constant 0 : i32
    %c0_i32_1 = arith.constant 0 : i32
    return %c0_i32, %c0_i32_0 : i32, i32
  }
  func.func @transform_3(%arg0: i32, %arg1: i32) -> (i32, i32) {
    %c0_i32 = arith.constant 0 : i32
    %c0_i32_0 = arith.constant 0 : i32
    return %c0_i32, %arg1 : i32, i32
  }
  func.func @transform_4(%arg0: i32, %arg1: i32) -> (i32, i32) {
    %c0_i32 = arith.constant 0 : i32
    %c0_i32_0 = arith.constant 0 : i32
    return %c0_i32, %arg1 : i32, i32
  }
  func.func @transform_5(%arg0: i32, %arg1: i32) -> (i32, i32) {
    %c0_i32 = arith.constant 0 : i32
    return %arg0, %arg1 : i32, i32
  }
}

</mosaic_0001>

<bundles_post_ra>
// kernel: tpu_custom_call.1
= control target key start
LH: loop header
LB: loop body
LE: loop exit
PB: predicated region body
PF: predicated region fallthrough
CT: control target
= control target key end

     0   :  { %10 = vsyncpa [#allocation3], 0  ;;  %s376_s0 = inlined_call_operand.hbm [shape: f32[16,32], index: 0, kind: input, shape index: {}]   ;;  %s377_s1 = inlined_call_operand.vmem [shape: f32[1,32], index: 1, kind: input, shape index: {}]   ;;  %s378_s2 = inlined_call_operand.vmem [shape: f32[1,32], index: 2, kind: input, shape index: {}]   ;;  %s379_s3 = inlined_call_operand.hbm [shape: f32[32,128], index: 3, kind: input, shape index: {}]   ;;  %s380_s4 = inlined_call_operand.vmem [shape: f32[1,128], index: 4, kind: input, shape index: {}]   ;;  %s381_s5 = inlined_call_operand.hbm [shape: f32[16,128], index: 5, kind: output, shape index: {}]  }
   0x1   :  { %11 = vsyncpa [#allocation6], 0 }
   0x2   :  { %12 = vsyncpa [#allocation4], 0  ;;  %s308_s18 = smov [#allocation2]  }
   0x3   :  { %s18_s19 = sshll.u32 %s308_s18, 4  ;;  %s19_s19 = int_to_ptr.vmem [resolvable:$true] %s18_s19 }
   0x4   :  { %s250_s20 = scalar_lea.vmem %s19_s19, 256  ;;  %p255_p1 = scmp.lt.s32.totalorder %s19_s19, %s19_s19 }
   0x5   :  { %p251_p0 = scmp.ne.s32.totalorder %s19_s19, %s250_s20  ;;  %p256_p2 = scmp.lt.s32.totalorder %s250_s20, %s250_s20 }
   0x7   :  { %p257_p3 = por %p256_p2, %p255_p1 }
   0x9   :  { %p258_p4 = pnand %p257_p3, %p251_p0 }
   0xb   :  { %261 = shalt.err (!%p258_p4)
}
   0xc   :  { %s309_s21 = smov 128   ;;  %s310_s22 = smov 8  }
   0xd   :  { %24 = dma.hbm_to_vmem [thread:$0]  %s376_s0, 256, %s19_s19, [#allocation3], %s309_s21, %s309_s21, %s310_s22  }
   0xe   :  { %s311_s25 = smov [#allocation5]  }
   0xf   :  { %s34_s26 = sshll.u32 %s311_s25, 4  ;;  %s35_s26 = int_to_ptr.vmem [resolvable:$true] %s34_s26 }
  0x10   :  { %s270_s27 = scalar_lea.vmem %s35_s26, 512  ;;  %p275_p6 = scmp.lt.s32.totalorder %s35_s26, %s35_s26 }
  0x11   :  { %p271_p5 = scmp.ne.s32.totalorder %s35_s26, %s270_s27  ;;  %p276_p7 = scmp.lt.s32.totalorder %s270_s27, %s270_s27 }
  0x13   :  { %p277_p8 = por %p276_p7, %p275_p6 }
  0x15   :  { %p278_p9 = pnand %p277_p8, %p271_p5 }
  0x17   :  { %281 = shalt.err (!%p278_p9)
}
  0x18   :  { %40 = dma.hbm_to_vmem [thread:$0]  %s379_s3, 512, %s35_s26, [#allocation6], %s309_s21, %s309_s21, %s310_s22  }
  0x19   :  { %302 = dma.done.wait [#allocation3], 256  }
  0x1a   :  { %303 = vsyncadd [#allocation3], 4294967040 }
  0x1b   :  { %304 = dma.done.wait [#allocation6], 512  }
  0x1c   :  { %305 = vsyncadd [#allocation6], 4294966784  ;;  %vm53_vm0 = vcmask 261120   ;;  %v49_v0 = vld [vmem:[#allocation2] sm:$0xff]  ;;  %v50_v1 = vld [vmem:[#allocation2 + $0x8] sm:$0xff] }
  0x1d   :  { %v54_v2 = vsel %vm53_vm0, %v49_v0, 0.0  ;;  %v57_v3 = vsel %vm53_vm0, %v50_v1, 0.0  ;;  %v100_v14 = vld [vmem:[#allocation5 + $0x18] sm:$0xff]  ;;  %v99_v15 = vld [vmem:[#allocation5 + $0x10] sm:$0xff]  ;;  %v98_v16 = vld [vmem:[#allocation5 + $0x8] sm:$0xff] }
  0x1e   :  { %55 = vadd.xlane.f32.xlu0 %v54_v2  ;;  %222 = vmatprep.subr.mxu0 %v100_v14  ;;  %v97_v17 = vld [vmem:[#allocation5] sm:$0xff]  ;;  %v211_v25 = vld [vmem:[%s377_s1] ss:$0 sm:$0xff]  ;;  %s312_s1 = smov [#allocation7]  }
  0x1f   :  { %223 = vmatpush3.msra.mxu0 %v100_v14  ;;  %v212_v27 = vld [vmem:[%s378_s2] ss:$0 sm:$0xff]  ;;  %s198_s9 = sshll.u32 %s312_s1, 4  ;;  %s199_s9 = int_to_ptr.vmem [resolvable:$true] %s198_s9 }
  0x20   :  { %224 = vmatprep.subr.mxu0 %v99_v15  ;;  %v213_v34 = vld [vmem:[%s380_s4] ss:$0 sm:$0xff]  ;;  %s282_s2 = scalar_lea.vmem %s199_s9, 256  ;;  %p287_p11 = scmp.lt.s32.totalorder %s199_s9, %s199_s9 }
  0x21   :  { %225 = vmatpush3.msra.mxu0 %v99_v15  ;;  %p283_p10 = scmp.ne.s32.totalorder %s199_s9, %s282_s2  ;;  %p288_p12 = scmp.lt.s32.totalorder %s282_s2, %s282_s2 }
  0x22   :  { %58 = vadd.xlane.f32.xlu0 %v57_v3  ;;  %226 = vmatprep.subr.mxu0 %v98_v16 }
  0x23   :  { %227 = vmatpush3.msra.mxu0 %v98_v16  ;;  %p289_p13 = por %p288_p12, %p287_p11 }
  0x24   :  { %228 = vmatprep.subr.mxu0 %v97_v17 }
  0x25   :  { %229 = vmatpush3.msra.mxu0 %v97_v17  ;;  %p290_p0 = pnand %p289_p13, %p283_p10 }
  0xa7   :  { %v56_v4 = vpop.xlane.xlu0 %55 }
  0xa8   :  { %v61_v5 = vmul.f32 0.03125, %v56_v4 }
  0xaa   :  { %v63_v6 = vsub.f32 %v49_v0, %v61_v5 }
  0xab   :  { %v59_v7 = vpop.xlane.xlu0 %58 }
  0xac   :  { %v62_v8 = vmul.f32 0.03125, %v59_v7  ;;  %v65_v9 = vmul.f32 %v63_v6, %v63_v6 }
  0xae   :  { %v64_v10 = vsub.f32 %v50_v1, %v62_v8  ;;  %v67_v11 = vsel %vm53_vm0, %v65_v9, 0.0 }
  0xaf   :  { %68 = vadd.xlane.f32.xlu1 %v67_v11 }
  0xb0   :  { %v66_v12 = vmul.f32 %v64_v10, %v64_v10 }
  0xb2   :  { %v70_v13 = vsel %vm53_vm0, %v66_v12, 0.0 }
  0xb3   :  { %71 = vadd.xlane.f32.xlu1 %v70_v13 }
 0x138   :  { %v69_v18 = vpop.xlane.xlu1 %68 }
 0x139   :  { %v73_v19 = vmul.f32 0.03125, %v69_v18 }
 0x13b   :  { %v75_v20 = vadd.f32 1e-05, %v73_v19 }
 0x13c   :  { %v72_v21 = vpop.xlane.xlu1 %71 }
 0x13d   :  { %238 = vrsqrt.f32 %v75_v20  ;;  %v74_v22 = vmul.f32 0.03125, %v72_v21 }
 0x13f   :  { %v76_v23 = vadd.f32 1e-05, %v74_v22 }
 0x141   :  { %240 = vrsqrt.f32 %v76_v23 }
 0x14a   :  { %v239_v24 = vpop.eup %238 }
 0x14b   :  { %v79_v26 = vmul.f32 %v239_v24, %v63_v6 }
 0x14d   :  { %v87_v28 = vmul.f32 %v211_v25, %v79_v26 }
 0x14e   :  { %v241_v29 = vpop.eup %240 }
 0x14f   :  { %v80_v30 = vmul.f32 %v241_v29, %v64_v10  ;;  %v95_v31 = vadd.f32 %v212_v27, %v87_v28 }
 0x151   :  { %v88_v32 = vmul.f32 %v211_v25, %v80_v30  ;;  %230 = vmatprep.mubr.msk.f32.mxu0 %vm53_vm0, %v95_v31 }
 0x153   :  { %v96_v33 = vadd.f32 %v212_v27, %v88_v32 }
 0x155   :  { %231 = vmatmul.mubr.msk.f32.vlgmr.msra.gmra.mxu0 %vm53_vm0, %v96_v33 }
 0x215   :  { %v232_v35 = vpop.f32.mrf.mxu0 }
 0x216   :  { %v186_v36 = vadd.f32 %v232_v35, %v213_v34 }
 0x217   :  { %v180_v37 = vpop.f32.mrf.mxu0 }
 0x218   :  { %v190_v38 = vmax.f32 %v186_v36, 0.0  ;;  %v181_v39 = vadd.f32 %v213_v34, %v180_v37 }
 0x21a   :  { %192 = vst [vmem:[#allocation7 + $0x8] sm:$0xff] %v190_v38  ;;  %v189_v40 = vmax.f32 %v181_v39, 0.0 }
 0x21c   :  { %191 = vst [vmem:[#allocation7] sm:$0xff] %v189_v40 }
 0x21d   :  { %293 = shalt.err (!%p290_p0)
}
 0x21e   :  { %204 = dma.vmem_to_hbm [thread:$0]  %s199_s9, 256, %s381_s5, [#allocation4], %s309_s21, %s309_s21, %s310_s22  }
 0x21f   :  { %306 = dma.done.wait [#allocation4], 256  }
 0x220   :  { %307 = vsyncadd [#allocation4], 4294967040 }
 0x221   :  { %208 = vsyncpa [#allocation3], 1 }
 0x222   :  { %209 = vsyncpa [#allocation6], 1 }
 0x223   :  { %210 = vsyncpa [#allocation4], 1 }

</bundles_post_ra>
